<compile_context>
chip_gen: v5e
topology: v5e:2x2
jax: 0.10.0
libtpu: 0.0.40
codegen_flags: <defaults>
</compile_context>

<pallas_src>
import jax
import jax.numpy as jnp
from jax.experimental import pallas as pl
from jax.experimental.pallas import tpu as pltpu


# ---------------------------------------------------------------------------
# Kernel
# ---------------------------------------------------------------------------

def _conv1x1_bn_relu_kernel(x_ref, w_ref, shift_ref, o_ref):
    # x_ref: (C_in, TM)  w_ref: (C_out, C_in)  shift_ref: (C_out, 1)  o_ref: (C_out, TM)
    # Mosaic keeps f32 matmul at full f32 precision by default (verified against
    # the f32 reference at 1e-5), so no explicit precision override is needed.
    y = jnp.dot(w_ref[...], x_ref[...], preferred_element_type=jnp.float32)
    y = y + shift_ref[...]                       # folded conv bias + BN shift (lane broadcast)
    o_ref[...] = jnp.maximum(y, 0.0).astype(o_ref.dtype)


# ---------------------------------------------------------------------------
# Tiling / VMEM sizing (generation-aware)
# ---------------------------------------------------------------------------

_VMEM_CAP_CACHE = None


def _vmem_capacity_bytes():
    """Physical VMEM per TensorCore; conservative fallback if the query fails."""
    global _VMEM_CAP_CACHE
    if _VMEM_CAP_CACHE is None:
        cap = 0
        try:
            cap = int(pltpu.get_tpu_info().vmem_capacity_bytes)
        except Exception:
            cap = 0
        if cap <= 0:
            cap = 64 * 1024 * 1024   # v7x physical = smallest across v5e/v6e/v7x
        _VMEM_CAP_CACHE = cap
    return _VMEM_CAP_CACHE


def _pick_tm(m, cin, cout, *, step_bytes_target=4 << 20):
    """Lane-tile size: target ~step_bytes_target of combined in+out HBM traffic
    per grid step, capped so the double-buffered in+out tiles stay within ~45%
    of physical VMEM (leaves headroom for Mosaic internal scratch)."""
    bytes_per_lane = 4 * (cin + cout)                              # f32 in + f32 out
    cap_lanes = int(_vmem_capacity_bytes() * 0.45) // (2 * bytes_per_lane)
    tm = min(step_bytes_target // bytes_per_lane, cap_lanes)
    tm = max((tm // 128) * 128, 128)
    if m <= tm:
        return m            # one lane-dense tile covers all of spatial (== full dim)
    return tm               # multiple of 128; last tile may be ragged


# ---------------------------------------------------------------------------
# pallas_call wrapper
# ---------------------------------------------------------------------------

def conv1x1_bn_relu_pallas(x3, w_fold, shift_fold, *, tm=None):
    """x3: (N, C_in, M) f32; w_fold: (C_out, C_in); shift_fold: (C_out, 1) -> (N, C_out, M) f32."""
    n, cin, m = x3.shape
    cout = w_fold.shape[0]
    if tm is None:
        tm = _pick_tm(m, cin, cout)

    # Ragged last M tile: Pallas drops out-of-bounds output writes, and because a
    # 1x1 conv is lane-wise independent, garbage OOB input lanes only ever feed
    # OOB output lanes -- no jnp.pad / extra HBM pass needed for raggedness.
    grid = (n, pl.cdiv(m, tm))

    # Double-buffered activation/output tiles + (tiny) resident weight/shift blocks.
    needed = 2 * 4 * tm * (cin + cout) + 2 * 4 * cout * (cin + 1)
    cap = _vmem_capacity_bytes()
    vmem_limit = int(min(max(needed + (8 << 20), 32 << 20), int(cap * 0.9)))
    vmem_limit = max(vmem_limit, needed + (1 << 20))

    return pl.pallas_call(
        _conv1x1_bn_relu_kernel,
        out_shape=jax.ShapeDtypeStruct((n, cout, m), jnp.float32),
        grid_spec=pltpu.PrefetchScalarGridSpec(
            num_scalar_prefetch=0,
            grid=grid,
            in_specs=[
                pl.BlockSpec((None, cin, tm), lambda b, i: (b, 0, i)),   # activations (lane-dense)
                pl.BlockSpec((cout, cin), lambda b, i: (0, 0)),          # BN-folded weights (resident)
                pl.BlockSpec((cout, 1), lambda b, i: (0, 0)),            # BN-folded bias (resident)
            ],
            out_specs=pl.BlockSpec((None, cout, tm), lambda b, i: (b, 0, i)),
        ),
        compiler_params=pltpu.CompilerParams(
            dimension_semantics=("parallel", "parallel"),
            vmem_limit_bytes=vmem_limit,
        ),
    )(x3, w_fold, shift_fold)


# ---------------------------------------------------------------------------
# Module parameters / forward
# ---------------------------------------------------------------------------

def init_params(key, cin, cout):
    # kaiming_normal_(mode='fan_out', nonlinearity='relu'):
    #   std = sqrt(2 / fan_out),  fan_out = C_out * kD*kH*kW = C_out
    std = (2.0 / float(cout)) ** 0.5
    w = std * jax.random.normal(key, (cout, cin), dtype=jnp.float32)  # (C_out, C_in, 1,1,1) squeezed
    return {
        "conv_w": w,
        "conv_b": jnp.zeros((cout,), jnp.float32),
        "bn_gamma": jnp.ones((cout,), jnp.float32),
        "bn_beta": jnp.zeros((cout,), jnp.float32),
        "bn_mean": jnp.zeros((cout,), jnp.float32),
        "bn_var": jnp.ones((cout,), jnp.float32),
        "bn_eps": 1e-5,
    }


def _fold_bn(params):
    w = params["conv_w"]
    b = params["conv_b"]
    scale = params["bn_gamma"] / jnp.sqrt(params["bn_var"] + params["bn_eps"])
    shift = params["bn_beta"] - params["bn_mean"] * scale
    w_fold = w * scale[:, None]          # (C_out, C_in)
    shift_fold = b * scale + shift       # (C_out,)
    return w_fold, shift_fold


def simple3dconv_forward(x, params, *, tm=None):
    """x: (N, C_in, D, H, W) float32 (PyTorch NCDHW).
    Returns (N, C_out, D+2, H+2, W+2) matching Conv3d(k=1, pad=1) -> BN(eval) -> ReLU."""
    w_fold, shift_fold = _fold_bn(params)
    n, cin, d, h, ww = x.shape
    cout = w_fold.shape[0]

    # TODO(synk): the pad=1 zero-border insertion on the input stays in XLA (one
    # pass over the C_in-sized activations). Folding it into the kernel would need
    # an in-kernel H/W lane gather from the unpadded to the padded plane layout,
    # which has no clean lane-dense BlockSpec; the padded *output* itself is now
    # written exactly once by the kernel (no broadcast/interior-insert epilogue).
    xp = jnp.pad(x, ((0, 0), (0, 0), (1, 1), (1, 1), (1, 1)))
    dp, hp, wp = d + 2, h + 2, ww + 2
    m_pad = dp * hp * wp

    # Channels-first with padded spatial flattened onto the lane axis: free reshape.
    x3 = xp.reshape(n, cin, m_pad)
    out3 = conv1x1_bn_relu_pallas(x3, w_fold, shift_fold.reshape(cout, 1), tm=tm)
    return out3.reshape(n, cout, dp, hp, wp)


# ---------------------------------------------------------------------------
# Pure-JAX reference + self-test
# ---------------------------------------------------------------------------

def _reference(x, params):
    w = params["conv_w"]; b = params["conv_b"]
    scale = params["bn_gamma"] / jnp.sqrt(params["bn_var"] + params["bn_eps"])
    shift = params["bn_beta"] - params["bn_mean"] * scale
    xp = jnp.pad(x, ((0, 0), (0, 0), (1, 1), (1, 1), (1, 1)))
    y = jnp.einsum("ncdhw,oc->nodhw", xp, w) + b[None, :, None, None, None]
    y = y * scale[None, :, None, None, None] + shift[None, :, None, None, None]
    return jnp.maximum(y, 0.0)


if __name__ == "__main__":
    key = jax.random.PRNGKey(0)
    k_w, k_x = jax.random.split(key)

    N, C_IN, C_OUT = 2, 4, 8
    D, H, W = 4, 8, 8

    params = init_params(k_w, C_IN, C_OUT)
    x = jax.random.normal(k_x, (N, C_IN, D, H, W), dtype=jnp.float32)

    out = jax.block_until_ready(simple3dconv_forward(x, params))
    ref = _reference(x, params)
    assert out.shape == (N, C_OUT, D + 2, H + 2, W + 2), out.shape
    assert jnp.allclose(out, ref, atol=1e-5, rtol=1e-5), "mismatch vs reference"

    # Exercise the ragged last-lane-tile path (m_pad = 6*10*10 = 600 with tm=128
    # -> 5 tiles, last one ragged) to validate the OOB-read / dropped-write path.
    out_ragged = jax.block_until_ready(simple3dconv_forward(x, params, tm=128))
    assert out_ragged.shape == out.shape, out_ragged.shape
    assert jnp.allclose(out_ragged, ref, atol=1e-5, rtol=1e-5), "ragged-tile mismatch"

    print("KERNEL_OK")
</pallas_src>

<mosaic_0001>
module attributes {stable_mosaic.version = 11 : i64} {
  func.func @_conv1x1_bn_relu_kernel(%arg0: i32, %arg1: i32, %arg2: memref<1x4x600xf32, #tpu.memory_space<vmem>>, %arg3: memref<8x4xf32, #tpu.memory_space<vmem>>, %arg4: memref<8x1xf32, #tpu.memory_space<vmem>>, %arg5: memref<1x8x600xf32, #tpu.memory_space<vmem>>) attributes {dimension_semantics = [#tpu.dimension_semantics<parallel>, #tpu.dimension_semantics<parallel>], iteration_bounds = array<i64: 2, 1>, scalar_prefetch = 0 : i64, scratch_operands = 0 : i64, tpu.core_type = #tpu.core_type<tc>, window_params = [{transform_indices = @transform_0, window_bounds = array<i64: 1, 4, 600>}, {pipeline_mode = #tpu.pipeline_mode<synchronous>, transform_indices = @transform_1, window_bounds = array<i64: 8, 4>}, {pipeline_mode = #tpu.pipeline_mode<synchronous>, transform_indices = @transform_2, window_bounds = array<i64: 8, 1>}, {transform_indices = @transform_3, window_bounds = array<i64: 1, 8, 600>}]} {
    %c0 = arith.constant 0 : index
    %c0_0 = arith.constant 0 : index
    %0 = vector.load %arg3[%c0, %c0_0] : memref<8x4xf32, #tpu.memory_space<vmem>>, vector<8x4xf32>
    %c0_1 = arith.constant 0 : index
    %c0_2 = arith.constant 0 : index
    %c0_3 = arith.constant 0 : index
    %1 = vector.load %arg2[%c0_1, %c0_2, %c0_3] : memref<1x4x600xf32, #tpu.memory_space<vmem>>, vector<1x4x600xf32>
    %2 = vector.shape_cast %1 : vector<1x4x600xf32> to vector<4x600xf32>
    %cst = arith.constant dense<0.000000e+00> : vector<8x600xf32>
    %3 = tpu.matmul %0, %2, %cst {dimension_numbers = #tpu.dot_dimension_numbers<[1], [0], [0], [1], [0, 0, 1, 1], [], []>} : vector<8x4xf32>, vector<4x600xf32>, vector<8x600xf32> -> vector<8x600xf32>
    %c0_4 = arith.constant 0 : index
    %c0_5 = arith.constant 0 : index
    %4 = vector.load %arg4[%c0_4, %c0_5] : memref<8x1xf32, #tpu.memory_space<vmem>>, vector<8x1xf32>
    %5 = vector.broadcast %4 : vector<8x1xf32> to vector<8x600xf32>
    %6 = arith.addf %3, %5 : vector<8x600xf32>
    %cst_6 = arith.constant 0.000000e+00 : f32
    %7 = vector.broadcast %cst_6 : f32 to vector<8x600xf32>
    %8 = arith.maximumf %6, %7 : vector<8x600xf32>
    %c0_7 = arith.constant 0 : index
    %c0_8 = arith.constant 0 : index
    %c0_9 = arith.constant 0 : index
    %9 = vector.load %arg5[%c0_7, %c0_8, %c0_9] : memref<1x8x600xf32, #tpu.memory_space<vmem>>, vector<1x8x600xf32>
    %10 = vector.shape_cast %9 : vector<1x8x600xf32> to vector<8x600xf32>
    %11 = vector.shape_cast %8 : vector<8x600xf32> to vector<1x8x600xf32>
    tpu.vector_store %arg5[%c0_7, %c0_8, %c0_9], %11 {strides = array<i32>} : memref<1x8x600xf32, #tpu.memory_space<vmem>>, vector<1x8x600xf32>,
    return
  }
  func.func @transform_0(%arg0: i32, %arg1: i32) -> (i32, i32, i32) {
    %c0_i32 = arith.constant 0 : i32
    %c0_i32_0 = arith.constant 0 : i32
    return %arg0, %c0_i32, %arg1 : i32, i32, i32
  }
  func.func @transform_1(%arg0: i32, %arg1: i32) -> (i32, i32) {
    %c0_i32 = arith.constant 0 : i32
    %c0_i32_0 = arith.constant 0 : i32
    %c0_i32_1 = arith.constant 0 : i32
    return %c0_i32, %c0_i32_0 : i32, i32
  }
  func.func @transform_2(%arg0: i32, %arg1: i32) -> (i32, i32) {
    %c0_i32 = arith.constant 0 : i32
    %c0_i32_0 = arith.constant 0 : i32
    %c0_i32_1 = arith.constant 0 : i32
    return %c0_i32, %c0_i32_0 : i32, i32
  }
  func.func @transform_3(%arg0: i32, %arg1: i32) -> (i32, i32, i32) {
    %c0_i32 = arith.constant 0 : i32
    %c0_i32_0 = arith.constant 0 : i32
    return %arg0, %c0_i32, %arg1 : i32, i32, i32
  }
}

</mosaic_0001>

<bundles_post_ra>
// kernel: tpu_custom_call.1
= control target key start
LH: loop header
LB: loop body
LE: loop exit
PB: predicated region body
PF: predicated region fallthrough
CT: control target
= control target key end

     0   :  { %8 = vsyncpa [#allocation3], 0  ;;  %s811_s0 = inlined_call_operand.hbm [shape: f32[2,4,600], index: 0, kind: input, shape index: {}]   ;;  %s812_s1 = inlined_call_operand.vmem [shape: f32[8,4], index: 1, kind: input, shape index: {}]   ;;  %s813_s2 = inlined_call_operand.vmem [shape: f32[8,1], index: 2, kind: input, shape index: {}]   ;;  %s814_s3 = inlined_call_operand.hbm [shape: f32[2,8,600], index: 3, kind: output, shape index: {}]  }
   0x1   :  { %10 = vsyncpa [#allocation3 + $0x1], 0 }
   0x2   :  { %11 = vsyncpa [#allocation4], 0 }
   0x3   :  { %13 = vsyncpa [#allocation4 + $0x1], 0  ;;  %s684_s12 = smov 0   ;;  %s686_s13 = smov 0  }
   0x4   :  { %s688_s14 = smov 0   ;;  %s690_s15 = smov 0  }
   0x5   :  { %s692_s16 = smov 0   ;;  %s694_s17 = smov 0  }
   0x6 LB: > { %s461_s18 = sadd.s32 4294967295, %s661_s17   ;;  %s462_s19 = sadd.s32 4294967294, %s661_s17   ;;  %s661_s17 = sphi %s694_s17, %s19_s17   ;;  %s657_s16 = sphi %s692_s16, %s823_s16   ;;  %s653_s15 = sphi %s690_s15, %s822_s15   ;;  %s649_s14 = sphi %s688_s14, %s821_s14   ;;  %s645_s13 = sphi %s686_s13, %s820_s13   ;;  %s641_s12 = sphi %s684_s12, %s819_s12  }
   0x7   : > { %s31_s20 = sadd.s32 1, %s657_s16  ;;  %s40_s21 = sadd.s32 1, %s649_s14 }
   0x8   : > { %p33_p0 = scmp.ge.s32.totalorder %s31_s20, 2  ;;  %p47_p1 = scmp.ne.s32.totalorder %s649_s14, %s645_s13 }
   0x9   : > { %p48_p2 = scmp.eq.s32.totalorder %s661_s17, 0  ;;  %p53_p3 = scmp.ne.s32.totalorder %s645_s13, %s641_s12 }
   0xa   : > { %s825_s20 = smov (%p33_p0, %s31_s20), 0  ;;  %p54_p5 = scmp.eq.s32.totalorder %s461_s18, 0 }
   0xb   : > { %p725_p4 = por %p48_p2, %p47_p1  ;;  %s35_s23 = ssub.s32 %s657_s16, %s825_s20 }
   0xc   : > { %p121_p6 = scmp.eq.s32.totalorder %s461_s18, 1  ;;  %p38_p7 = scmp.eq.s32.totalorder %s35_s23, 0 }
   0xd   : > { %p731_p8 = por %p54_p5, %p53_p3  ;;  %p127_p10 = scmp.eq.s32.totalorder %s462_s19, 1 }
   0xe   : > { %p735_p9 = por %p121_p6, %p47_p1  ;;  %p464_p12 = scmp.ge.s32.totalorder %s661_s17, 2 }
   0xf   : > { %s740_s26 = scalar_select %p38_p7, %s649_s14, %s40_s21  }
  0x10   : > { %p742_p11 = por %p127_p10, %p53_p3  ;;  %p497_p13 = scmp.lt.s32.totalorder %s661_s17, 2 }
  0x11   : > { %s153_s28 = sand.u32 1, %s649_s14   ;;  %s481_s30 = smul.u32 20, %s657_s16 }
  0x12   : > { %s480_s29 = smul.u32 20, %s153_s28  ;;  %p490_p0 = pnand %p497_p13, %p725_p4 }
  0x13   : > { %p466_p2 = scmp.ge.s32.totalorder %s661_s17, 1  ;;  %s164_s6 = scalar_lea.hbm %s811_s0, %s481_s30 }
  0x14   : > { %s157_s7 = scalar_lea.vmem [#allocation2], %s480_s29  ;;  %s166_s9 = sshll.u32 %s164_s6, 4  ;;  %s167_s9 = int_to_ptr.hbm [resolvable:$true] %s166_s9 }
  0x15   : > { %s168_s8 = sshll.u32 %s157_s7, 4  ;;  %s154_s10 = scalar_lea.sflag [#allocation3], %s153_s28  ;;  %s169_s8 = int_to_ptr.vmem [resolvable:$true] %s168_s8 }
  0x16   : > { %492 = dma.hbm_to_vmem [thread:$0]  (!%p490_p0), %s167_s9, 320, %s169_s8, %s154_s10  }
  0x17   : > { %p173_p1 = scmp.lt.s32.totalorder %s661_s17, 3 }
  0x19   : > { %p174_p3 = pnand %p466_p2, %p173_p1 }
  0x1a   : > { %s758_s11 = sand.u32 (!%p174_p3), 1, %s645_s13  }
  0x1b   : > { %177 = sbr.rel (%p174_p3) target bundleno = 186 (0xba), region = 32  ;;  %s180_s19 = scalar_lea.sflag (!%p174_p3), [#allocation3], %s758_s11 }
  0x1c   : > { %s482_s18 = smul.u32 (!%p174_p3), 20, %s758_s11 }
  0x1e   : > { %s183_s21 = scalar_lea.vmem (!%p174_p3), [#allocation2], %s482_s18 }
  0x20   : > { %632 = dma.done.wait (%p731_p8), %s180_s19, 320  }
  0x21   : > { %634 = vsyncadd (%p731_p8), %s180_s19, 4294966976  ;;  %v663_v0 = vmov 0   ;;  %v210_v1 = vld [vmem:[%s183_s21] sm:$0xff]  ;;  %v212_v2 = vld [vmem:[%s183_s21 + $0x10] sm:$0xf]  ;;  %vm236_vm0 = vcmask 1043456  }
  0x22   : > { %548 = vset.pattern.permute.xlu0 %v663_v0  ;;  %222 = vst [vmem:[#allocation1] ss:$2 sm:$0xff] %v210_v1  ;;  %v211_v3 = vld [vmem:[%s183_s21 + $0x8] sm:$0xff]  ;;  %vm232_vm1 = vcmask 31744   ;;  %s483_s24 = smul.u32 40, %s758_s11  ;;  %vm356_vm2 = vcmask 719872  }
  0x23   : > { %v213_v4 = vld [vmem:[%s813_s2] sm:$0xff]  ;;  %226 = vst [vmem:[#allocation1 + $0x20] ss:$2 sm:$0xff] %v212_v2  ;;  %s484_s30 = smul.u32 40, %s653_s15  ;;  %s359_s15 = scalar_lea.sflag [#allocation4], %s758_s11 }
  0x24   : > { %216 = vperm.xlu0 %548, %v213_v4   ;;  %224 = vst [vmem:[#allocation1 + $0x10] ss:$2 sm:$0xff] %v211_v3  ;;  %v209_v5 = vld [vmem:[%s812_s1] sm:$0xff]  ;;  %s206_s4 = scalar_lea.vmem [#allocation5], %s483_s24  ;;  %s599_s22 = scalar_lea.hbm %s814_s3, 80 }
  0x25   : > { %s372_s7 = scalar_lea.hbm %s814_s3, %s484_s30  ;;  %s374_s8 = sshll.u32 %s206_s4, 4  ;;  %s375_s8 = int_to_ptr.vmem [resolvable:$true] %s374_s8 }
  0x26   : > { %s376_s9 = sshll.u32 %s372_s7, 4  ;;  %s377_s9 = int_to_ptr.hbm [resolvable:$true] %s376_s9 }
  0x27   : > { %s593_s10 = sshra.s32 %s377_s9, 4  ;;  %s594_s10 = int_to_ptr.hbm [resolvable:$true] %s593_s10 }
  0x28   : > { %s595_s18 = scalar_lea.hbm %s594_s10, 40  ;;  %p600_p7 = scmp.lt.s32.totalorder %s594_s10, %s814_s3 }
  0x29   : > { %v227_v6 = vld.sshfl [vmem:[#allocation1] sm:$0xff pattern:$0x75316420]  ;;  %v228_v7 = vld.sshfl [vmem:[#allocation1 + $0x8] sm:$0xff pattern:$0x75316420]  ;;  %p596_p4 = scmp.ne.s32.totalorder %s594_s10, %s595_s18  ;;  %p601_p8 = scmp.lt.s32.totalorder %s599_s22, %s595_s18 }
  0x2a   : > { %467 = vmatpush.msk.msra.mxu0 %vm236_vm0, %v227_v6  ;;  %v231_v8 = vld.sshfl [vmem:[#allocation1 + $0x20] sm:$0xff pattern:$0x75316420]  ;;  %469 = vmatpush.msk.msra.mxu1 %vm236_vm0, %v228_v7 }
  0x2b   : > { %468 = vmatmul.msk.f32.vlgmr.msra.gmra.mxu0 %vm232_vm1, %v209_v5  ;;  %v229_v9 = vld.sshfl [vmem:[#allocation1 + $0x10] sm:$0xff pattern:$0x75316420]  ;;  %v230_v10 = vld.sshfl [vmem:[#allocation1 + $0x18] sm:$0xff pattern:$0x75316420]  ;;  %470 = vmatmul.msk.f32.vlgmr.msra.gmra.mxu1 %vm232_vm1, %v209_v5  ;;  %p597_p5 = pnand %p596_p4, %p735_p9  ;;  %p602_p10 = por %p601_p8, %p600_p7 }
  0x2c   : > { %475 = vmatpush.msk.msrb.mxu0 %vm236_vm0, %v231_v8  ;;  %471 = vmatpush.msk.msra.mxu2 %vm236_vm0, %v229_v9 }
  0x2d   : > { %473 = vmatpush.msk.msra.mxu3 %vm236_vm0, %v230_v10  ;;  %472 = vmatmul.msk.f32.vlgmr.msra.gmra.mxu2 %vm232_vm1, %v209_v5  ;;  %p598_p6 = pneg %p597_p5 }
  0x2e   : > { %474 = vmatmul.msk.f32.vlgmr.msra.gmra.mxu3 %vm232_vm1, %v209_v5 }
  0x2f   : > { %p603_p13 = pnand %p602_p10, %p598_p6 }
  0x33   : > { %476 = vmatmul.msk.f32.vlgmr.msrb.gmra.mxu0 %vm232_vm1, %v209_v5 }
  0x96   : > { %v217_v11 = vpop.permute.xlu0 %216 }
  0xa8   : > { %v264_v12 = vpop.f32.mrf.mxu0  ;;  %v284_v13 = vpop.f32.mrf.mxu1 }
  0xa9   : > { %v265_v14 = vadd.f32 %v264_v12, %v217_v11  ;;  %v285_v15 = vadd.f32 %v284_v13, %v217_v11 }
  0xab   : > { %v347_v16 = vmax.f32 %v265_v14, 0.0  ;;  %v348_v17 = vmax.f32 %v285_v15, 0.0 }
  0xad   : > { %352 = vst [vmem:[%s206_s4] sm:$0xff] %v347_v16 }
  0xae   : > { %353 = vst [vmem:[%s206_s4 + $0x8] sm:$0xff] %v348_v17 }
  0xb0   : > { %v304_v18 = vpop.f32.mrf.mxu2  ;;  %v344_v19 = vpop.f32.mrf.mxu0 }
  0xb1   : > { %v305_v20 = vadd.f32 %v304_v18, %v217_v11  ;;  %v324_v21 = vpop.f32.mrf.mxu3  ;;  %v345_v22 = vadd.f32 %v344_v19, %v217_v11 }
  0xb2   : > { %v325_v23 = vadd.f32 %v324_v21, %v217_v11 }
  0xb3   : > { %v349_v24 = vmax.f32 %v305_v20, 0.0  ;;  %v351_v25 = vmax.f32 %v345_v22, 0.0 }
  0xb4   : > { %v350_v26 = vmax.f32 %v325_v23, 0.0 }
  0xb5   : > { %354 = vst [vmem:[%s206_s4 + $0x10] sm:$0xff] %v349_v24 }
  0xb6   : > { %355 = vst [vmem:[%s206_s4 + $0x18] sm:$0xff] %v350_v26 }
  0xb7   : > { %357 = vst.msk [vmem:[%s206_s4 + $0x20] sm:$0xff] %vm356_vm2, %v351_v25 }
  0xb8   : > { %606 = shalt.err (!%p603_p13)
}
  0xb9   : > { %487 = dma.vmem_to_hbm [thread:$0]  (%p735_p9), %s375_s8, 640, %s377_s9, %s359_s15  }
  0xba PF: > { %s388_s11 = sand.u32 1, %s641_s12   ;;  %p494_p0 = pnand %p464_p12, %p742_p11 }
  0xbb   : > { %s389_s29 = scalar_lea.sflag [#allocation4], %s388_s11 }
  0xbc   : > { %p495_p2 = pneg %p494_p0 }
  0xbe   : > { %636 = dma.done.wait (%p495_p2), %s389_s29, 640  }
  0xbf   : > { %638 = vsyncadd (%p495_p2), %s389_s29, 4294966656  ;;  %s19_s17 = sadd.s32 1, %s661_s17   ;;  %s819_s12 = smov %s645_s13 }
  0xc0   : > { %p16_p1 = scmp.ge.s32.totalorder %s19_s17, 4   ;;  %s820_s13 = smov %s649_s14 }
  0xc1   : > { %s821_s14 = smov %s740_s26  ;;  %s822_s15 = smov %s657_s16 }
  0xc2   : > { %s823_s16 = smov %s825_s20  ;;  %18 = sbr.rel (!%p16_p1) target bundleno = 6 (0x6), region = 79 }
  0xc7   :  { %395 = vsyncpa [#allocation3], 1 }
  0xc8   :  { %397 = vsyncpa [#allocation3 + $0x1], 1 }
  0xc9   :  { %398 = vsyncpa [#allocation4], 1 }
  0xca   :  { %400 = vsyncpa [#allocation4 + $0x1], 1 }

</bundles_post_ra>
